<compile_context>
chip_gen: v7x
topology: tpu7x:2x2x1
jax: 0.10.0
libtpu: 0.0.40
codegen_flags: <defaults>
</compile_context>

<pallas_src>
import functools

import jax
import jax.numpy as jnp
from jax.experimental import pallas as pl
from jax.experimental.pallas import tpu as pltpu


# ----------------------------------------------------------------------------- kernel
def _decoder_kernel(x_ref, w0_ref, b0_ref, w1_ref, b1_ref, w2_ref, b2_ref, out_ref):
    # In-kernel cast of the input tile to the compute dtype (no-op when dtypes match).
    # NOTE: rows past B in a partial last block are uninitialized VMEM; safe because
    # every output row depends only on its own input row and OOB output rows are
    # clipped on writeback.  Any future cross-row reduction must mask them.
    x = x_ref[...].astype(w0_ref.dtype)
    # hidden0: Linear + ReLU  (MXU matmul, f32 accumulate; bias add + ReLU in f32)
    h = jnp.dot(x, w0_ref[...], preferred_element_type=jnp.float32) + b0_ref[...]
    h = jnp.maximum(h, 0.0).astype(w1_ref.dtype)   # back to compute dtype for next MXU pass
    # hidden1: Linear + ReLU
    h = jnp.dot(h, w1_ref[...], preferred_element_type=jnp.float32) + b1_ref[...]
    h = jnp.maximum(h, 0.0).astype(w2_ref.dtype)
    # hidden2: Linear (no activation); d0 is a multiple of 128 -> lane-dense store
    out_ref[...] = (
        jnp.dot(h, w2_ref[...], preferred_element_type=jnp.float32) + b2_ref[...]
    ).astype(out_ref.dtype)


# ------------------------------------------------------------------------- tile sizing
def _round_up(x, m):
    return ((x + m - 1) // m) * m


def _num_tensorcores():
    """Best-effort detection of per-chip TensorCore count (2 on v7x, else 1)."""
    try:
        kind = jax.devices()[0].device_kind.lower()
    except Exception:  # no devices visible at trace time
        return 1
    return 2 if "v7" in kind else 1


def _auto_block_b(B, d_in, d0, d1, d2, x_bytes, out_bytes, num_tc, sub):
    """Batch tile: large enough to approach the HBM roofline, small enough for VMEM."""
    pad = lambda d: _round_up(d, 128)  # lane padding of every feature dim
    # per-row VMEM bytes: double-buffered in/out tiles + f32 intermediates (h0, h1)
    row_bytes = 2 * (pad(d_in) * x_bytes + pad(d0) * out_bytes) + (pad(d1) + pad(d2)) * 4
    budget = 20 * 1024 * 1024  # comfortably under the 32 MiB scoped default (v6e/v7x)
    cap = max(sub, (budget // row_bytes) // sub * sub)

    if B <= sub:
        return B  # single full-dim block (full-extent blocks bypass the (8,128) rule)

    # Few, large grid steps: each step carries ~0.35 us fixed overhead, and at these
    # widths the kernel is memory/overhead bound, so bigger tiles win.
    blk = min(4096, cap, _round_up(B, sub))

    # v7x only (2 TensorCores): if the whole batch would fit in one step, split it into
    # two equal tiles so the "parallel" batch axis shards across both cores.
    if num_tc >= 2 and blk >= _round_up(B, sub) and B >= 4 * sub:
        blk = max(sub, _round_up(pl.cdiv(B, 2), sub))
    return blk


# ------------------------------------------------------------------------------ wrapper
def prepare_decoder_params(w0, b0, w1, b1, w2, b2, compute_dtype=jnp.bfloat16):
    """One-time (outside jit) cast: weights -> compute dtype, biases -> f32.

    Passing pre-cast params to decoder_forward makes its in-jit casts no-ops, removing
    six extra XLA ops per call (matters for small-batch, launch-dominated inference).
    """
    cd = jnp.dtype(compute_dtype)
    return (w0.astype(cd), b0.astype(jnp.float32),
            w1.astype(cd), b1.astype(jnp.float32),
            w2.astype(cd), b2.astype(jnp.float32))


@functools.partial(jax.jit, static_argnames=("block_b", "compute_dtype", "out_dtype"))
def decoder_forward(x, w0, b0, w1, b1, w2, b2, *, block_b=None,
                    compute_dtype=jnp.bfloat16, out_dtype=None):
    """x: (B, dims[3]+numSpecies); w_i: (in_i, out_i); b_i: (1, out_i).

    compute_dtype=bf16 streams weights / casts x in-kernel for the MXU; accumulation is
    always f32.  On v5e (no bf16 VPU) compute_dtype=float32 may be preferable — the MXU
    is far from saturated either way, so the bf16 casts are the only real cost there.
    """
    B, d_in = x.shape
    d2, d1, d0 = w0.shape[1], w1.shape[1], w2.shape[1]
    out_dtype = x.dtype if out_dtype is None else jnp.dtype(out_dtype)

    cd = jnp.dtype(compute_dtype)
    x_bytes = jnp.dtype(x.dtype).itemsize
    out_bytes = jnp.dtype(out_dtype).itemsize
    # sublane packing: any sub-32-bit tensor touching the batch tile needs 16-row align
    sub = 16 if min(x_bytes, out_bytes, cd.itemsize) < 4 else 8

    if block_b is None:
        block_b = _auto_block_b(B, d_in, d0, d1, d2, x_bytes, out_bytes,
                                _num_tensorcores(), sub)
    elif block_b >= B:
        block_b = B  # one full-dim block
    else:
        # round caller-supplied tile to the sublane multiple so the (8,128) rule holds;
        # a partial last block (B % block_b != 0) is handled by masked writeback.
        block_b = _round_up(block_b, sub)

    # No wrapper cast of x (saves a full HBM pass); weights/bias casts are no-ops if the
    # caller used prepare_decoder_params().
    w0c, w1c, w2c = w0.astype(cd), w1.astype(cd), w2.astype(cd)
    b0f, b1f, b2f = (b0.astype(jnp.float32), b1.astype(jnp.float32),
                     b2.astype(jnp.float32))

    grid = (pl.cdiv(B, block_b),)

    # Grid-invariant operands: constant block index every step.  Pallas skips the
    # re-DMA when the block index repeats; the double-buffer footprint is ~22 KB.
    full = lambda shape: pl.BlockSpec(shape, lambda i: (0, 0))

    flops = 2 * B * (d_in * d2 + d2 * d1 + d1 * d0)
    bytes_accessed = (
        x.size * x_bytes
        + sum(a.size * a.dtype.itemsize for a in (w0c, b0f, w1c, b1f, w2c, b2f))
        + B * d0 * out_bytes
    )

    return pl.pallas_call(
        _decoder_kernel,
        out_shape=jax.ShapeDtypeStruct((B, d0), out_dtype),
        grid_spec=pltpu.PrefetchScalarGridSpec(
            num_scalar_prefetch=0,
            grid=grid,
            in_specs=[
                pl.BlockSpec((block_b, d_in), lambda i: (i, 0)),
                full(w0c.shape), full(b0f.shape),
                full(w1c.shape), full(b1f.shape),
                full(w2c.shape), full(b2f.shape),
            ],
            out_specs=pl.BlockSpec((block_b, d0), lambda i: (i, 0)),
        ),
        compiler_params=pltpu.CompilerParams(
            dimension_semantics=("parallel",),
            vmem_limit_bytes=32 * 1024 * 1024,  # explicit, v7x-safe
        ),
        cost_estimate=pl.CostEstimate(
            flops=flops, transcendentals=0, bytes_accessed=bytes_accessed),
    )(x, w0c, b0f, w1c, b1f, w2c, b2f)


# --------------------------------------------------------------------- params / reference
def init_decoder_params(key, dims, num_species, dtype=jnp.float32):
    """Deterministic init matching the PyTorch module's shapes.

    PyTorch: hidden0 Linear(dims[3]+numSpecies -> dims[2])  kaiming_normal (relu)
             hidden1 Linear(dims[2] -> dims[1])             kaiming_normal (relu)
             hidden2 Linear(dims[1] -> dims[0])             default init
    Weights are returned already transposed to (in, out).
    """
    d0, d1, d2, d3 = dims
    in0 = d3 + num_species
    k = jax.random.split(key, 6)

    def kaiming_normal(kk, fan_in, fan_out):
        std = jnp.sqrt(2.0 / fan_in)  # gain for relu = sqrt(2)
        return (jax.random.normal(kk, (fan_in, fan_out), dtype=jnp.float32) * std).astype(dtype)

    def default_linear(kk, fan_in, fan_out):
        bound = 1.0 / jnp.sqrt(fan_in)
        return jax.random.uniform(kk, (fan_in, fan_out), dtype=jnp.float32,
                                  minval=-bound, maxval=bound).astype(dtype)

    def default_bias(kk, fan_in, fan_out):
        bound = 1.0 / jnp.sqrt(fan_in)
        return jax.random.uniform(kk, (1, fan_out), dtype=jnp.float32,
                                  minval=-bound, maxval=bound).astype(dtype)

    w0 = kaiming_normal(k[0], in0, d2)
    b0 = default_bias(k[1], in0, d2)
    w1 = kaiming_normal(k[2], d2, d1)
    b1 = default_bias(k[3], d2, d1)
    w2 = default_linear(k[4], d1, d0)
    b2 = default_bias(k[5], d1, d0)
    return w0, b0, w1, b1, w2, b2


def decoder_ref(x, w0, b0, w1, b1, w2, b2, compute_dtype=jnp.bfloat16,
                out_dtype=None):
    """Pure-JAX reference with the same dtype handling as the kernel."""
    cd = jnp.dtype(compute_dtype)
    f32 = jnp.float32
    od = x.dtype if out_dtype is None else jnp.dtype(out_dtype)
    h = jnp.maximum(
        jnp.dot(x.astype(cd), w0.astype(cd), preferred_element_type=f32) + b0.astype(f32), 0.0)
    h = jnp.maximum(
        jnp.dot(h.astype(cd), w1.astype(cd), preferred_element_type=f32) + b1.astype(f32), 0.0)
    return (jnp.dot(h.astype(cd), w2.astype(cd), preferred_element_type=f32)
            + b2.astype(f32)).astype(od)


# ---------------------------------------------------------------------------------- main
if __name__ == "__main__":
    # dims = [num_genes, hidden1, hidden2, latent]; decoder: latent+numSpecies -> genes
    dims = [128, 64, 32, 16]
    num_species = 2

    key = jax.random.PRNGKey(0)
    kx1, kx2, kx3, kp = jax.random.split(key, 4)
    params = init_decoder_params(kp, dims, num_species)
    params_bf16 = prepare_decoder_params(*params)          # one-time cast, outside jit

    # 1) default path (auto tile, in-kernel bf16 cast of x, f32 accumulation),
    #    pre-cast params so the in-jit weight casts are no-ops.
    x1 = jax.random.normal(kx1, (32, dims[3] + num_species), dtype=jnp.float32)
    out1 = jax.block_until_ready(decoder_forward(x1, *params_bf16))
    ref1 = decoder_ref(x1, *params, compute_dtype=jnp.bfloat16)
    assert out1.shape == (32, dims[0])
    assert jnp.allclose(out1, ref1, atol=1e-2, rtol=1e-2), "bf16 path mismatch"

    # 2) multi-step grid with a partial (masked) last block
    x2 = jax.random.normal(kx2, (40, dims[3] + num_species), dtype=jnp.float32)
    out2 = jax.block_until_ready(decoder_forward(x2, *params_bf16, block_b=16))
    ref2 = decoder_ref(x2, *params, compute_dtype=jnp.bfloat16)
    assert out2.shape == (40, dims[0])
    assert jnp.allclose(out2, ref2, atol=1e-2, rtol=1e-2), "tiled bf16 path mismatch"

    # 3) full-f32 compute path (tight tolerance; preferred default on v5e)
    out3 = jax.block_until_ready(decoder_forward(x1, *params, compute_dtype=jnp.float32))
    ref3 = decoder_ref(x1, *params, compute_dtype=jnp.float32)
    assert jnp.allclose(out3, ref3, atol=1e-4, rtol=1e-4), "f32 path mismatch"

    # 4) larger batch exercising the raised auto-tile cap + partial last block,
    #    with the opt-in bf16 output stream.
    x3 = jax.random.normal(kx3, (520, dims[3] + num_species), dtype=jnp.float32)
    out4 = jax.block_until_ready(
        decoder_forward(x3, *params_bf16, out_dtype=jnp.bfloat16))
    ref4 = decoder_ref(x3, *params, compute_dtype=jnp.bfloat16, out_dtype=jnp.bfloat16)
    assert out4.shape == (520, dims[0]) and out4.dtype == jnp.bfloat16
    assert jnp.allclose(out4.astype(jnp.float32), ref4.astype(jnp.float32),
                        atol=3e-2, rtol=3e-2), "bf16-out path mismatch"

    print("KERNEL_OK")
</pallas_src>

<mosaic_0001>
module attributes {stable_mosaic.version = 11 : i64} {
  func.func @_decoder_kernel(%arg0: i32, %arg1: memref<32x18xf32, #tpu.memory_space<vmem>>, %arg2: memref<18x32xbf16, #tpu.memory_space<vmem>>, %arg3: memref<1x32xf32, #tpu.memory_space<vmem>>, %arg4: memref<32x64xbf16, #tpu.memory_space<vmem>>, %arg5: memref<1x64xf32, #tpu.memory_space<vmem>>, %arg6: memref<64x128xbf16, #tpu.memory_space<vmem>>, %arg7: memref<1x128xf32, #tpu.memory_space<vmem>>, %arg8: memref<32x128xf32, #tpu.memory_space<vmem>>) attributes {dimension_semantics = [#tpu.dimension_semantics<parallel>], iteration_bounds = array<i64: 1>, scalar_prefetch = 0 : i64, scratch_operands = 0 : i64, tpu.core_type = #tpu.core_type<tc>, window_params = [{transform_indices = @transform_0, window_bounds = array<i64: 32, 18>}, {pipeline_mode = #tpu.pipeline_mode<synchronous>, transform_indices = @transform_1, window_bounds = array<i64: 18, 32>}, {pipeline_mode = #tpu.pipeline_mode<synchronous>, transform_indices = @transform_2, window_bounds = array<i64: 1, 32>}, {pipeline_mode = #tpu.pipeline_mode<synchronous>, transform_indices = @transform_3, window_bounds = array<i64: 32, 64>}, {pipeline_mode = #tpu.pipeline_mode<synchronous>, transform_indices = @transform_4, window_bounds = array<i64: 1, 64>}, {pipeline_mode = #tpu.pipeline_mode<synchronous>, transform_indices = @transform_5, window_bounds = array<i64: 64, 128>}, {pipeline_mode = #tpu.pipeline_mode<synchronous>, transform_indices = @transform_6, window_bounds = array<i64: 1, 128>}, {transform_indices = @transform_7, window_bounds = array<i64: 32, 128>}]} {
    %c0 = arith.constant 0 : index
    %c0_0 = arith.constant 0 : index
    %0 = vector.load %arg1[%c0, %c0_0] : memref<32x18xf32, #tpu.memory_space<vmem>>, vector<32x18xf32>
    %1 = arith.truncf %0 : vector<32x18xf32> to vector<32x18xbf16>
    %c0_1 = arith.constant 0 : index
    %c0_2 = arith.constant 0 : index
    %2 = vector.load %arg2[%c0_1, %c0_2] : memref<18x32xbf16, #tpu.memory_space<vmem>>, vector<18x32xbf16>
    %cst = arith.constant dense<0.000000e+00> : vector<32x32xf32>
    %3 = tpu.matmul %1, %2, %cst {dimension_numbers = #tpu.dot_dimension_numbers<[1], [0], [0], [1], [0, 0, 1, 1], [], []>} : vector<32x18xbf16>, vector<18x32xbf16>, vector<32x32xf32> -> vector<32x32xf32>
    %c0_3 = arith.constant 0 : index
    %c0_4 = arith.constant 0 : index
    %4 = vector.load %arg3[%c0_3, %c0_4] : memref<1x32xf32, #tpu.memory_space<vmem>>, vector<1x32xf32>
    %5 = vector.broadcast %4 : vector<1x32xf32> to vector<32x32xf32>
    %6 = arith.addf %3, %5 : vector<32x32xf32>
    %cst_5 = arith.constant 0.000000e+00 : f32
    %7 = vector.broadcast %cst_5 : f32 to vector<32x32xf32>
    %8 = arith.maximumf %6, %7 : vector<32x32xf32>
    %9 = arith.truncf %8 : vector<32x32xf32> to vector<32x32xbf16>
    %c0_6 = arith.constant 0 : index
    %c0_7 = arith.constant 0 : index
    %10 = vector.load %arg4[%c0_6, %c0_7] : memref<32x64xbf16, #tpu.memory_space<vmem>>, vector<32x64xbf16>
    %cst_8 = arith.constant dense<0.000000e+00> : vector<32x64xf32>
    %11 = tpu.matmul %9, %10, %cst_8 {dimension_numbers = #tpu.dot_dimension_numbers<[1], [0], [0], [1], [0, 0, 1, 1], [], []>} : vector<32x32xbf16>, vector<32x64xbf16>, vector<32x64xf32> -> vector<32x64xf32>
    %c0_9 = arith.constant 0 : index
    %c0_10 = arith.constant 0 : index
    %12 = vector.load %arg5[%c0_9, %c0_10] : memref<1x64xf32, #tpu.memory_space<vmem>>, vector<1x64xf32>
    %13 = vector.broadcast %12 : vector<1x64xf32> to vector<32x64xf32>
    %14 = arith.addf %11, %13 : vector<32x64xf32>
    %cst_11 = arith.constant 0.000000e+00 : f32
    %15 = vector.broadcast %cst_11 : f32 to vector<32x64xf32>
    %16 = arith.maximumf %14, %15 : vector<32x64xf32>
    %17 = arith.truncf %16 : vector<32x64xf32> to vector<32x64xbf16>
    %c0_12 = arith.constant 0 : index
    %c0_13 = arith.constant 0 : index
    %18 = vector.load %arg6[%c0_12, %c0_13] : memref<64x128xbf16, #tpu.memory_space<vmem>>, vector<64x128xbf16>
    %cst_14 = arith.constant dense<0.000000e+00> : vector<32x128xf32>
    %19 = tpu.matmul %17, %18, %cst_14 {dimension_numbers = #tpu.dot_dimension_numbers<[1], [0], [0], [1], [0, 0, 1, 1], [], []>} : vector<32x64xbf16>, vector<64x128xbf16>, vector<32x128xf32> -> vector<32x128xf32>
    %c0_15 = arith.constant 0 : index
    %c0_16 = arith.constant 0 : index
    %20 = vector.load %arg7[%c0_15, %c0_16] : memref<1x128xf32, #tpu.memory_space<vmem>>, vector<1x128xf32>
    %21 = vector.broadcast %20 : vector<1x128xf32> to vector<32x128xf32>
    %22 = arith.addf %19, %21 : vector<32x128xf32>
    %c0_17 = arith.constant 0 : index
    %c0_18 = arith.constant 0 : index
    %23 = vector.load %arg8[%c0_17, %c0_18] : memref<32x128xf32, #tpu.memory_space<vmem>>, vector<32x128xf32>
    tpu.vector_store %arg8[%c0_17, %c0_18], %22 {strides = array<i32>} : memref<32x128xf32, #tpu.memory_space<vmem>>, vector<32x128xf32>,
    return
  }
  func.func @transform_0(%arg0: i32) -> (i32, i32) {
    %c0_i32 = arith.constant 0 : i32
    %c0_i32_0 = arith.constant 0 : i32
    return %arg0, %c0_i32 : i32, i32
  }
  func.func @transform_1(%arg0: i32) -> (i32, i32) {
    %c0_i32 = arith.constant 0 : i32
    %c0_i32_0 = arith.constant 0 : i32
    %c0_i32_1 = arith.constant 0 : i32
    return %c0_i32, %c0_i32_0 : i32, i32
  }
  func.func @transform_2(%arg0: i32) -> (i32, i32) {
    %c0_i32 = arith.constant 0 : i32
    %c0_i32_0 = arith.constant 0 : i32
    %c0_i32_1 = arith.constant 0 : i32
    return %c0_i32, %c0_i32_0 : i32, i32
  }
  func.func @transform_3(%arg0: i32) -> (i32, i32) {
    %c0_i32 = arith.constant 0 : i32
    %c0_i32_0 = arith.constant 0 : i32
    %c0_i32_1 = arith.constant 0 : i32
    return %c0_i32, %c0_i32_0 : i32, i32
  }
  func.func @transform_4(%arg0: i32) -> (i32, i32) {
    %c0_i32 = arith.constant 0 : i32
    %c0_i32_0 = arith.constant 0 : i32
    %c0_i32_1 = arith.constant 0 : i32
    return %c0_i32, %c0_i32_0 : i32, i32
  }
  func.func @transform_5(%arg0: i32) -> (i32, i32) {
    %c0_i32 = arith.constant 0 : i32
    %c0_i32_0 = arith.constant 0 : i32
    %c0_i32_1 = arith.constant 0 : i32
    return %c0_i32, %c0_i32_0 : i32, i32
  }
  func.func @transform_6(%arg0: i32) -> (i32, i32) {
    %c0_i32 = arith.constant 0 : i32
    %c0_i32_0 = arith.constant 0 : i32
    %c0_i32_1 = arith.constant 0 : i32
    return %c0_i32, %c0_i32_0 : i32, i32
  }
  func.func @transform_7(%arg0: i32) -> (i32, i32) {
    %c0_i32 = arith.constant 0 : i32
    %c0_i32_0 = arith.constant 0 : i32
    return %arg0, %c0_i32 : i32, i32
  }
}

</mosaic_0001>

<bundles_post_ra>
// kernel: decoder_forward.1
= control target key start
LH: loop header
LB: loop body
LE: loop exit
PB: predicated region body
PF: predicated region fallthrough
CT: control target
= control target key end

     0   :  { %vm60_vm0 = vcmask 1040384   ;;  %vm53_vm1 = vcmask 146432   ;;  %s514_s0 = inlined_call_operand.vmem [shape: f32[32,18], index: 0, kind: input, shape index: {}]   ;;  %s515_s1 = inlined_call_operand.vmem [shape: bf16[18,32], index: 1, kind: input, shape index: {}]   ;;  %s516_s2 = inlined_call_operand.vmem [shape: f32[1,32], index: 2, kind: input, shape index: {}]   ;;  %s517_s3 = inlined_call_operand.vmem [shape: bf16[32,64], index: 3, kind: input, shape index: {}]   ;;  %s518_s4 = inlined_call_operand.vmem [shape: f32[1,64], index: 4, kind: input, shape index: {}]   ;;  %s519_s5 = inlined_call_operand.vmem [shape: bf16[64,128], index: 5, kind: input, shape index: {}]   ;;  %s520_s6 = inlined_call_operand.vmem [shape: f32[1,128], index: 6, kind: input, shape index: {}]   ;;  %s521_s7 = inlined_call_operand.hbm [shape: f32[32,128], index: 7, kind: output, shape index: {}]  }
   0x1   :  { %v382_v0 = vld [vmem:[%s515_s1] sm:$0xff]   ;;  %v383_v1 = vld [vmem:[%s515_s1 + $0x8] ss:$0 sps:$4 sm:$0x11]   ;;  %v30_v4 = vld [vmem:[%s514_s0 + $0x10] sm:$0xff] }
   0x2   :  { %v28_v2 = vld [vmem:[%s514_s0] sm:$0xff]  ;;  %350 = vmatprep.subr.bf16.mxu1 %v382_v0  ;;  %v29_v3 = vld [vmem:[%s514_s0 + $0x8] sm:$0xff]  ;;  %v62_v5 = vsel %vm60_vm0, %v383_v1, 0  ;;  %v31_v7 = vld [vmem:[%s514_s0 + $0x18] sm:$0xff] }
   0x3   :  { %351 = vmatpush3.bf16.msra.mxu1 %v382_v0  ;;  %v32_v6 = vpack.c.bf16 %v29_v3, %v28_v2  ;;  %v33_v8 = vpack.c.bf16 %v31_v7, %v30_v4 }
   0x4   :  { %378 = vmatprep.subr.msk.bf16.mxu1 %vm60_vm0, %v383_v1 }
   0x5   :  { %354 = vmatprep.mubr.msk.bf16.mxu1 %vm53_vm1, %v32_v6 }
   0x7   :  { %353 = vmatpush3.bf16.msra.mxu1 %v62_v5 }
   0x8   :  { %12 = vsyncpa [#allocation3], 0  ;;  %v384_v9 = vld [vmem:[%s517_s3] sm:$0xff]   ;;  %v385_v10 = vld [vmem:[%s517_s3 + $0x8] sm:$0xff]   ;;  %vm142_vm2 = vcmask 261120   ;;  %vm243_vm3 = vcmask 523264  }
   0x9   :  { %358 = vmatprep.subr.bf16.mxu1 %v384_v9  ;;  %v386_v11 = vld [vmem:[%s519_s5] sm:$0xff]   ;;  %v387_v12 = vld [vmem:[%s519_s5 + $0x8] sm:$0xff]   ;;  %v388_v28 = vld [vmem:[%s519_s5 + $0x10] sm:$0xff]  }
   0xa   :  { %355 = vmatmul.mubr.msk.bf16.vlgmr.msra.gmra.mrb[0].mxu1 %vm53_vm1, %v33_v8  ;;  %366 = vmatprep.subr.bf16.mxu0 %v386_v11  ;;  %v319_v13 = vld [vmem:[%s516_s2] ss:$0 sm:$0xff]  ;;  %v389_v29 = vld [vmem:[%s519_s5 + $0x18] sm:$0xff]  }
   0xb   :  { %359 = vmatpush3.bf16.msra.mxu1 %v384_v9  ;;  %367 = vmatpush3.bf16.msra.mxu0 %v386_v11  ;;  %v324_v30 = vld [vmem:[%s518_s4] ss:$0 sm:$0xff]  ;;  %s414_s4 = smov [#allocation2]  }
   0xc   :  { %360 = vmatprep.subr.bf16.mxu1 %v385_v10  ;;  %368 = vmatprep.subr.bf16.mxu0 %v387_v12  ;;  %v329_v45 = vld [vmem:[%s520_s6] ss:$0 sm:$0xff]  ;;  %s308_s26 = sshll.u32 %s414_s4, 4  ;;  %s309_s26 = int_to_ptr.vmem [resolvable:$true] %s308_s26 }
   0xd   :  { %s390_s27 = scalar_lea.vmem %s309_s26, 512  ;;  %p395_p1 = scmp.lt.s32.totalorder %s309_s26, %s309_s26 }
   0xe   :  { %p391_p0 = scmp.ne.s32.totalorder %s309_s26, %s390_s27  ;;  %p396_p2 = scmp.lt.s32.totalorder %s390_s27, %s390_s27 }
   0xf   :  { %361 = vmatpush3.bf16.msra.mxu1 %v385_v10  ;;  %369 = vmatpush3.bf16.msra.mxu0 %v387_v12 }
  0x10   :  { %370 = vmatprep.subr.bf16.mxu0 %v388_v28  ;;  %p397_p3 = por %p396_p2, %p395_p1 }
  0x12   :  { %p398_p4 = pnand %p397_p3, %p391_p0 }
  0x13   :  { %371 = vmatpush3.bf16.msra.mxu0 %v388_v28 }
  0x14   :  { %372 = vmatprep.subr.bf16.mxu0 %v389_v29 }
  0x17   :  { %373 = vmatpush3.bf16.msra.mxu0 %v389_v29 }
  0xdd   :  { %v356_v14 = vpop.f32.mrb[0].mxu1 }
  0xde   :  { %v107_v15 = vadd.f32 %v356_v14, %v319_v13  ;;  %v98_v16 = vpop.f32.mrb[1].mxu1 }
  0xdf   :  { %v99_v17 = vadd.f32 %v319_v13, %v98_v16  ;;  %v357_v18 = vpop.f32.mrb[2].mxu1 }
  0xe0   :  { %v110_v19 = vadd.f32 %v357_v18, %v319_v13  ;;  %v101_v20 = vpop.f32.mrb[3].mxu1  ;;  %v115_v22 = vmax.f32 %v107_v15, 0.0 }
  0xe1   :  { %v102_v21 = vadd.f32 %v319_v13, %v101_v20  ;;  %v113_v24 = vmax.f32 %v99_v17, 0.0 }
  0xe2   :  { %v116_v23 = vmax.f32 %v110_v19, 0.0 }
  0xe3   :  { %v114_v25 = vmax.f32 %v102_v21, 0.0 }
  0xe4   :  { %v118_v26 = vpack.c.bf16 %v116_v23, %v115_v22 }
  0xe5   :  { %v117_v27 = vpack.c.bf16 %v114_v25, %v113_v24 }
  0xe7   :  { %362 = vmatprep.mubr.msk.bf16.mxu1 %vm142_vm2, %v117_v27 }
  0xe8   :  { %363 = vmatmul.mubr.msk.bf16.vlgmr.msra.gmra.mrb[4].mxu1 %vm142_vm2, %v118_v26 }
 0x1bb   :  { %v364_v31 = vpop.f32.mrb[4].mxu1 }
 0x1bc   :  { %v192_v32 = vadd.f32 %v364_v31, %v324_v30  ;;  %v183_v33 = vpop.f32.mrb[5].mxu1 }
 0x1bd   :  { %v184_v34 = vadd.f32 %v324_v30, %v183_v33  ;;  %v365_v35 = vpop.f32.mrb[6].mxu1 }
 0x1be   :  { %v195_v36 = vadd.f32 %v365_v35, %v324_v30  ;;  %v186_v37 = vpop.f32.mrb[7].mxu1  ;;  %v200_v39 = vmax.f32 %v192_v32, 0.0 }
 0x1bf   :  { %v187_v38 = vadd.f32 %v324_v30, %v186_v37  ;;  %v198_v41 = vmax.f32 %v184_v34, 0.0 }
 0x1c0   :  { %v201_v40 = vmax.f32 %v195_v36, 0.0 }
 0x1c1   :  { %v199_v42 = vmax.f32 %v187_v38, 0.0 }
 0x1c2   :  { %v203_v43 = vpack.c.bf16 %v201_v40, %v200_v39 }
 0x1c3   :  { %v202_v44 = vpack.c.bf16 %v199_v42, %v198_v41 }
 0x1c5   :  { %374 = vmatprep.mubr.msk.bf16.mxu0 %vm243_vm3, %v202_v44 }
 0x1c6   :  { %375 = vmatmul.mubr.msk.bf16.vlgmr.msra.gmra.mrb[0].mxu0 %vm243_vm3, %v203_v43 }
 0x299   :  { %v376_v46 = vpop.f32.mrb[0].mxu0 }
 0x29a   :  { %v293_v47 = vadd.f32 %v376_v46, %v329_v45  ;;  %v284_v48 = vpop.f32.mrb[1].mxu0 }
 0x29b   :  { %v285_v49 = vadd.f32 %v329_v45, %v284_v48  ;;  %v377_v50 = vpop.f32.mrb[2].mxu0 }
 0x29c   :  { %301 = vst [vmem:[#allocation2 + $0x10] sm:$0xff] %v293_v47  ;;  %v296_v51 = vadd.f32 %v377_v50, %v329_v45  ;;  %v287_v52 = vpop.f32.mrb[3].mxu0 }
 0x29d   :  { %299 = vst [vmem:[#allocation2] sm:$0xff] %v285_v49  ;;  %v288_v53 = vadd.f32 %v329_v45, %v287_v52 }
 0x29e   :  { %302 = vst [vmem:[#allocation2 + $0x18] sm:$0xff] %v296_v51 }
 0x29f   :  { %300 = vst [vmem:[#allocation2 + $0x8] sm:$0xff] %v288_v53 }
 0x2a0   :  { %401 = shalt.err (!%p398_p4)
}
 0x2a1   :  { %s402_s29 = scalar_lea.hbm %s521_s7, 512 }
 0x2a2   :  { %p403_p5 = scmp.ne.s32.totalorder %s521_s7, %s402_s29  ;;  %p406_p6 = scmp.lt.u32.totalorder %s402_s29, %s521_s7 }
 0x2a4   :  { %p408_p7 = pnand %p406_p6, %p403_p5 }
 0x2a6   :  { %411 = shalt.err (!%p408_p7)
}
 0x2a7   :  { %s415_s11 = smov 128   ;;  %s416_s12 = smov 8  }
 0x2a8   :  { %314 = dma.vmem_to_hbm [thread:$0]  %s309_s26, 512, %s521_s7, [#allocation3], %s415_s11, %s415_s11, %s416_s12  }
 0x2a9   :  { %412 = dma.done.wait [#allocation3], 512  }
 0x2aa   :  { %413 = vsyncadd [#allocation3], 4294966784 }
 0x2ab   :  { %318 = vsyncpa [#allocation3], 1 }

</bundles_post_ra>
